<compile_context>
chip_gen: v7x
topology: tpu7x:2x2x1
jax: 0.10.0
libtpu: 0.0.40
codegen_flags: <defaults>
</compile_context>

<pallas_src>
import math
import jax
import jax.numpy as jnp
from jax.experimental import pallas as pl
from jax.experimental.pallas import tpu as pltpu


def _round_up(x, m):
    return ((x + m - 1) // m) * m


# ---------------------------------------------------------------------------
# Pallas kernels:  out[g, Co, M] = w[Co, Kd] @ x[g, Kd, M]
# ---------------------------------------------------------------------------
def _mm_kernel_fullk(w_ref, x_ref, o_ref):
    # Whole reduction dim in one MXU pass: no accumulator scratch, and the weight
    # block index is constant across the inner (lane) grid axis -> no re-fetch.
    o_ref[...] = jnp.dot(
        w_ref[...], x_ref[...], preferred_element_type=jnp.float32
    ).astype(o_ref.dtype)


def _mm_kernel_acc(w_ref, x_ref, o_ref, acc_ref):
    @pl.when(pl.program_id(3) == 0)
    def _():
        acc_ref[...] = jnp.zeros_like(acc_ref)

    acc_ref[...] += jnp.dot(w_ref[...], x_ref[...],
                            preferred_element_type=jnp.float32)

    @pl.when(pl.program_id(3) == pl.num_programs(3) - 1)
    def _():
        o_ref[...] = acc_ref[...].astype(o_ref.dtype)


def grouped_matmul(w, x, *, tm, tn, tk, out_dtype=jnp.float32):
    """w: [Co, Kd], x: [G, Kd, M] -> [G, Co, M], f32 accumulation on the MXU."""
    Co, Kd = w.shape
    G, Kd2, M = x.shape
    assert Kd == Kd2
    assert Co % tm == 0 and M % tn == 0 and Kd % tk == 0
    ksteps = Kd // tk

    out_sds = jax.ShapeDtypeStruct((G, Co, M), out_dtype)
    cost = pl.CostEstimate(
        flops=2 * G * Co * M * Kd,
        transcendentals=0,
        bytes_accessed=(w.size * w.dtype.itemsize
                        + x.size * x.dtype.itemsize
                        + G * Co * M * jnp.dtype(out_dtype).itemsize),
    )

    if ksteps == 1:
        grid = (G, Co // tm, M // tn)
        in_specs = [
            pl.BlockSpec((tm, tk), lambda g, i, j: (i, 0)),            # weights
            pl.BlockSpec((None, tk, tn), lambda g, i, j: (g, 0, j)),   # im2col input
        ]
        out_specs = pl.BlockSpec((None, tm, tn), lambda g, i, j: (g, i, j))
        scratch = []
        kernel = _mm_kernel_fullk
        dims = ("parallel", "parallel", "parallel")
    else:
        grid = (G, Co // tm, M // tn, ksteps)
        in_specs = [
            pl.BlockSpec((tm, tk), lambda g, i, j, k: (i, k)),
            pl.BlockSpec((None, tk, tn), lambda g, i, j, k: (g, k, j)),
        ]
        out_specs = pl.BlockSpec((None, tm, tn), lambda g, i, j, k: (g, i, j))
        scratch = [pltpu.VMEM((tm, tn), jnp.float32)]
        kernel = _mm_kernel_acc
        dims = ("parallel", "parallel", "parallel", "arbitrary")

    return pl.pallas_call(
        kernel,
        out_shape=out_sds,
        grid_spec=pltpu.PrefetchScalarGridSpec(
            num_scalar_prefetch=0,
            grid=grid,
            in_specs=in_specs,
            out_specs=out_specs,
            scratch_shapes=scratch,
        ),
        compiler_params=pltpu.CompilerParams(
            dimension_semantics=dims,
            vmem_limit_bytes=32 * 1024 * 1024,
        ),
        cost_estimate=cost,
    )(w, x)


# ---------------------------------------------------------------------------
# im2col glue (XLA).  K-dim ordering (c, kh, kw) matches weight.reshape(Co, C*K*K).
# ---------------------------------------------------------------------------
def _im2col(x, K, stride, dilation, pad, *, batched):
    """x: [N, C, H, W] ->
       batched=True : ([N, C*K*K, Ho*Wo], Ho, Wo)   (no transposes at all)
       batched=False: ([1, C*K*K, N*Ho*Wo], Ho, Wo) (batch packed onto lanes)"""
    N, C, H, W = x.shape
    xp = jnp.pad(x, ((0, 0), (0, 0), (pad, pad), (pad, pad)))
    Hp, Wp = H + 2 * pad, W + 2 * pad
    Ho = (Hp - dilation * (K - 1) - 1) // stride + 1
    Wo = (Wp - dilation * (K - 1) - 1) // stride + 1
    if not batched:
        # channel-to-front on the small, pre-expansion tensor only
        xp = jnp.transpose(xp, (1, 0, 2, 3))                       # [C, N, Hp, Wp]
    cols = []
    for kh in range(K):
        for kw in range(K):
            h0, w0 = kh * dilation, kw * dilation
            cols.append(xp[..., h0:h0 + (Ho - 1) * stride + 1:stride,
                               w0:w0 + (Wo - 1) * stride + 1:stride])
    if batched:
        cols = jnp.stack(cols, axis=2)                             # [N, C, KK, Ho, Wo]
        out = cols.reshape(N, C * K * K, Ho * Wo)
    else:
        cols = jnp.stack(cols, axis=1)                             # [C, KK, N, Ho, Wo]
        out = cols.reshape(1, C * K * K, N * Ho * Wo)
    return out, Ho, Wo


# ---------------------------------------------------------------------------
# Tile selection
# ---------------------------------------------------------------------------
_MAX_FULLK = 1024            # largest reduction dim handled in a single MXU pass
_LANE_TILES = (512, 384, 256, 128)
_BATCHED_WASTE_LIMIT = 1.15  # acceptable per-image lane-padding waste for the
                             # transpose-free layout


def _pick_lane_tile(Msp):
    best = min(_round_up(Msp, t) for t in _LANE_TILES)
    for t in _LANE_TILES:                       # largest first
        pad = _round_up(Msp, t)
        if pad <= best * 1.04:
            return t, pad
    return 128, _round_up(Msp, 128)             # unreachable


def _pick_tiles(Co, Kd, Msp):
    co_g = _round_up(Co, 16)                    # bf16 sublane granularity (also /8 f32)
    tm = min(co_g, 512)
    Co_pad = _round_up(Co, tm)
    tn, M_pad = _pick_lane_tile(Msp)
    if Kd <= _MAX_FULLK:
        tk = _round_up(Kd, 16)                  # no 128-rounding of the reduction dim
        Kd_pad = tk
    else:
        tk = 256
        Kd_pad = _round_up(Kd, tk)
    return (tm, tn, tk), (Co_pad, M_pad, Kd_pad)


# ---------------------------------------------------------------------------
# DynamicConv2d (JAX/Pallas)
# ---------------------------------------------------------------------------
class DynamicConv2dPallas:
    def __init__(self, max_in_channels, max_out_channels, kernel_size=1,
                 stride=1, dilation=1, *, key, compute_dtype=jnp.bfloat16):
        assert kernel_size % 2 == 1, "get_same_padding(K)=K//2 assumes odd kernel size"
        self.max_in_channels = max_in_channels
        self.max_out_channels = max_out_channels
        self.kernel_size = kernel_size
        self.stride = stride
        self.dilation = dilation
        self.active_out_channel = max_out_channels
        self.compute_dtype = compute_dtype      # MXU input dtype; accumulation always f32
        fan_in = max_in_channels * kernel_size * kernel_size
        bound = 1.0 / math.sqrt(fan_in)         # nn.Conv2d default-ish init
        self.weight = jax.random.uniform(
            key, (max_out_channels, max_in_channels, kernel_size, kernel_size),
            dtype=jnp.float32, minval=-bound, maxval=bound)

    def get_active_filter(self, out_channel, in_channel):
        return self.weight[:out_channel, :in_channel, :, :]

    def __call__(self, x, out_channel=None):
        # NOTE: every distinct (in_channel, out_channel, H, W) combo is a distinct
        # static shape -> separate trace/compile (inherent to dynamic channel slicing).
        if out_channel is None:
            out_channel = self.active_out_channel
        N, in_channel, H, W = x.shape
        K = self.kernel_size
        pad = K // 2                                   # 'same' padding for odd kernels

        filters = self.get_active_filter(out_channel, in_channel)       # [Co, Ci, K, K]
        Kd = in_channel * K * K
        w2 = filters.reshape(out_channel, Kd).astype(self.compute_dtype)

        Hp, Wp = H + 2 * pad, W + 2 * pad
        Ho = (Hp - self.dilation * (K - 1) - 1) // self.stride + 1
        Wo = (Wp - self.dilation * (K - 1) - 1) // self.stride + 1
        sp = Ho * Wo
        batched = (N == 1) or (_round_up(sp, 128) <= _BATCHED_WASTE_LIMIT * sp)

        xq, Ho2, Wo2 = _im2col(x.astype(self.compute_dtype), K, self.stride,
                               self.dilation, pad, batched=batched)      # [G, Kd, Msp]
        assert (Ho2, Wo2) == (Ho, Wo)
        G, _, Msp = xq.shape

        (tm, tn, tk), (Co_pad, M_pad, Kd_pad) = _pick_tiles(out_channel, Kd, Msp)
        w_p = jnp.pad(w2, ((0, Co_pad - out_channel), (0, Kd_pad - Kd)))
        x_p = jnp.pad(xq, ((0, 0), (0, Kd_pad - Kd), (0, M_pad - Msp)))

        y = grouped_matmul(w_p, x_p, tm=tm, tn=tn, tk=tk, out_dtype=x.dtype)

        if batched:
            return y[:, :out_channel, :sp].reshape(N, out_channel, Ho, Wo)
        y = y[0, :out_channel, :N * sp].reshape(out_channel, N, Ho, Wo)
        return jnp.transpose(y, (1, 0, 2, 3))                            # NCHW


# ---------------------------------------------------------------------------
# Reference (pure XLA) for correctness check
# ---------------------------------------------------------------------------
def _reference_conv(x, filters, stride, dilation, pad):
    return jax.lax.conv_general_dilated(
        x, filters,
        window_strides=(stride, stride),
        padding=((pad, pad), (pad, pad)),
        rhs_dilation=(dilation, dilation),
        dimension_numbers=("NCHW", "OIHW", "NCHW"),
    )


if __name__ == "__main__":
    root = jax.random.PRNGKey(0)
    k_w1, k_w2, k_w3, k_x, k_m1, k_m2 = jax.random.split(root, 6)

    # Input with fewer channels than max_in_channels (exercises dynamic slicing).
    x = jax.random.normal(k_x, (2, 6, 16, 16), dtype=jnp.float32)

    # 1) 3x3, stride 1: batched transpose-free path, full-K kernel (bf16 then f32).
    mod = DynamicConv2dPallas(8, 16, kernel_size=3, stride=1, dilation=1, key=k_w1)
    ref = _reference_conv(x, mod.get_active_filter(12, 6), stride=1, dilation=1, pad=1)
    y = jax.block_until_ready(mod(x, out_channel=12))
    assert y.shape == ref.shape == (2, 12, 16, 16), (y.shape, ref.shape)
    assert jnp.allclose(y, ref, atol=3e-2, rtol=3e-2), float(jnp.max(jnp.abs(y - ref)))

    mod.compute_dtype = jnp.float32
    y32 = jax.block_until_ready(mod(x, out_channel=12))
    assert jnp.allclose(y32, ref, atol=1e-4, rtol=1e-4), float(jnp.max(jnp.abs(y32 - ref)))

    # 2) 3x3, stride 2: batch-flattened (lane-packed) path.
    mod2 = DynamicConv2dPallas(8, 16, kernel_size=3, stride=2, dilation=1, key=k_w2)
    ref2 = _reference_conv(x, mod2.get_active_filter(10, 6), stride=2, dilation=1, pad=1)
    y2 = jax.block_until_ready(mod2(x, out_channel=10))
    assert y2.shape == ref2.shape == (2, 10, 8, 8), (y2.shape, ref2.shape)
    assert jnp.allclose(y2, ref2, atol=3e-2, rtol=3e-2), float(jnp.max(jnp.abs(y2 - ref2)))

    # 3) 1x1 pointwise conv (the dominant op in MobileNetV3).
    mod3 = DynamicConv2dPallas(8, 16, kernel_size=1, stride=1, dilation=1, key=k_w3)
    ref3 = _reference_conv(x, mod3.get_active_filter(12, 6), stride=1, dilation=1, pad=0)
    y3 = jax.block_until_ready(mod3(x, out_channel=12))
    assert y3.shape == ref3.shape == (2, 12, 16, 16), (y3.shape, ref3.shape)
    assert jnp.allclose(y3, ref3, atol=3e-2, rtol=3e-2), float(jnp.max(jnp.abs(y3 - ref3)))

    # 4) Exercise the k-reduction (accumulator) kernel path directly.
    wt = jax.random.normal(k_m1, (16, 256), dtype=jnp.float32)
    xt = jax.random.normal(k_m2, (2, 256, 256), dtype=jnp.float32)
    yt = jax.block_until_ready(
        grouped_matmul(wt, xt, tm=16, tn=128, tk=128, out_dtype=jnp.float32))
    ref_mm = jnp.einsum("ok,gkm->gom", wt, xt, precision=jax.lax.Precision.HIGHEST)
    rel = float(jnp.max(jnp.abs(yt - ref_mm)) / (jnp.max(jnp.abs(ref_mm)) + 1e-6))
    assert rel < 2e-2, rel

    print("KERNEL_OK")
</pallas_src>

<mosaic_0001>
module attributes {stable_mosaic.version = 11 : i64} {
  func.func @_mm_kernel_fullk(%arg0: i32, %arg1: i32, %arg2: i32, %arg3: memref<16x64xbf16, #tpu.memory_space<vmem>>, %arg4: memref<1x64x256xbf16, #tpu.memory_space<vmem>>, %arg5: memref<1x16x256xf32, #tpu.memory_space<vmem>>) attributes {dimension_semantics = [#tpu.dimension_semantics<parallel>, #tpu.dimension_semantics<parallel>, #tpu.dimension_semantics<parallel>], iteration_bounds = array<i64: 2, 1, 1>, scalar_prefetch = 0 : i64, scratch_operands = 0 : i64, tpu.core_type = #tpu.core_type<tc>, window_params = [{transform_indices = @transform_0, window_bounds = array<i64: 16, 64>}, {transform_indices = @transform_1, window_bounds = array<i64: 1, 64, 256>}, {transform_indices = @transform_2, window_bounds = array<i64: 1, 16, 256>}]} {
    %c0 = arith.constant 0 : index
    %c0_0 = arith.constant 0 : index
    %0 = vector.load %arg3[%c0, %c0_0] : memref<16x64xbf16, #tpu.memory_space<vmem>>, vector<16x64xbf16>
    %c0_1 = arith.constant 0 : index
    %c0_2 = arith.constant 0 : index
    %c0_3 = arith.constant 0 : index
    %1 = vector.load %arg4[%c0_1, %c0_2, %c0_3] : memref<1x64x256xbf16, #tpu.memory_space<vmem>>, vector<1x64x256xbf16>
    %2 = vector.shape_cast %1 : vector<1x64x256xbf16> to vector<64x256xbf16>
    %cst = arith.constant dense<0.000000e+00> : vector<16x256xf32>
    %3 = tpu.matmul %0, %2, %cst {dimension_numbers = #tpu.dot_dimension_numbers<[1], [0], [0], [1], [0, 0, 1, 1], [], []>} : vector<16x64xbf16>, vector<64x256xbf16>, vector<16x256xf32> -> vector<16x256xf32>
    %c0_4 = arith.constant 0 : index
    %c0_5 = arith.constant 0 : index
    %c0_6 = arith.constant 0 : index
    %4 = vector.load %arg5[%c0_4, %c0_5, %c0_6] : memref<1x16x256xf32, #tpu.memory_space<vmem>>, vector<1x16x256xf32>
    %5 = vector.shape_cast %4 : vector<1x16x256xf32> to vector<16x256xf32>
    %6 = vector.shape_cast %3 : vector<16x256xf32> to vector<1x16x256xf32>
    tpu.vector_store %arg5[%c0_4, %c0_5, %c0_6], %6 {strides = array<i32>} : memref<1x16x256xf32, #tpu.memory_space<vmem>>, vector<1x16x256xf32>,
    return
  }
  func.func @transform_0(%arg0: i32, %arg1: i32, %arg2: i32) -> (i32, i32) {
    %c0_i32 = arith.constant 0 : i32
    %c0_i32_0 = arith.constant 0 : i32
    return %arg1, %c0_i32 : i32, i32
  }
  func.func @transform_1(%arg0: i32, %arg1: i32, %arg2: i32) -> (i32, i32, i32) {
    %c0_i32 = arith.constant 0 : i32
    %c0_i32_0 = arith.constant 0 : i32
    return %arg0, %c0_i32, %arg2 : i32, i32, i32
  }
  func.func @transform_2(%arg0: i32, %arg1: i32, %arg2: i32) -> (i32, i32, i32) {
    %c0_i32 = arith.constant 0 : i32
    return %arg0, %arg1, %arg2 : i32, i32, i32
  }
}

</mosaic_0001>

<bundles_post_ra>
// kernel: tpu_custom_call.1
= control target key start
LH: loop header
LB: loop body
LE: loop exit
PB: predicated region body
PF: predicated region fallthrough
CT: control target
= control target key end

     0   :  { %7 = vsyncpa [#allocation3], 0  ;;  %s961_s0 = inlined_call_operand.hbm [shape: bf16[16,64], index: 0, kind: input, shape index: {}]   ;;  %s962_s1 = inlined_call_operand.hbm [shape: bf16[2,64,256], index: 1, kind: input, shape index: {}]   ;;  %s963_s2 = inlined_call_operand.hbm [shape: f32[2,16,256], index: 2, kind: output, shape index: {}]  }
   0x1   :  { %8 = vsyncpa [#allocation6], 0 }
   0x2   :  { %10 = vsyncpa [#allocation6 + $0x1], 0 }
   0x3   :  { %11 = vsyncpa [#allocation4], 0 }
   0x4   :  { %13 = vsyncpa [#allocation4 + $0x1], 0  ;;  %s741_s9 = smov 0   ;;  %s743_s10 = smov 0  }
   0x5   :  { %s745_s11 = smov 0   ;;  %s747_s12 = smov 0  }
   0x6   :  { %s749_s13 = smov 0   ;;  %s751_s14 = smov 0  }
   0x7 LB: > { %s448_s15 = sadd.s32 4294967295, %s714_s14   ;;  %s449_s16 = sadd.s32 4294967294, %s714_s14   ;;  %s714_s14 = sphi %s751_s14, %s19_s14   ;;  %s710_s13 = sphi %s749_s13, %s987_s13   ;;  %s706_s12 = sphi %s747_s12, %s986_s12   ;;  %s702_s11 = sphi %s745_s11, %s985_s11   ;;  %s698_s10 = sphi %s743_s10, %s984_s10   ;;  %s694_s9 = sphi %s741_s9, %s983_s9  }
   0x8   : > { %p86_p0 = scmp.ne.s32.totalorder %s698_s10, %s694_s9  ;;  %p775_p1 = scmp.eq.s32.totalorder %s448_s15, 0 }
   0x9   : > { %p779_p2 = scmp.eq.s32.totalorder %s448_s15, 1  ;;  %p120_p3 = scmp.eq.s32.totalorder %s449_s16, 1 }
   0xa   : > { %s968_s17 = scalar_select %p775_p1, 1, 0 }
   0xb   : > { %s969_s18 = scalar_select %p779_p2, 1, 0 }
   0xc   : > { %p785_p4 = por %p775_p1, %p86_p0  ;;  %p450_p5 = scmp.ge.s32.totalorder %s714_s14, 1 }
   0xd   : > { %p790_p6 = por %p120_p3, %p86_p0  ;;  %p127_p7 = scmp.lt.s32.totalorder %s714_s14, 3 }
   0xe   : > { %s970_s19 = scalar_select %p785_p4, 1, 0 }
   0xf   : > { %s971_s20 = scalar_select %p790_p6, 1, 0 }
  0x10   : > { %p795_p8 = pnand %p450_p5, %p127_p7  ;;  %s716_s22 = smov [#allocation2]  }
  0x11   : > { %s142_s23 = sshll.u32 %s716_s22, 4  ;;  %s38_s25 = sadd.s32 1, %s710_s13  ;;  %s143_s23 = int_to_ptr.vmem [resolvable:$true] %s142_s23 }
  0x12   : > { %s972_s21 = scalar_select %p795_p8, 1, 0 }
  0x13   : > { %p485_p9 = pneg %p795_p8  ;;  %s570_s28 = scalar_lea.hbm %s961_s0, 128 }
  0x14   : > { %p571_p12 = scmp.ne.s32.totalorder %s961_s0, %s570_s28  ;;  %p577_p5 = scmp.lt.u32.totalorder %s570_s28, %s961_s0 }
  0x15   : > { %p804_p11 = pnand %p485_p9, %p775_p1 }
  0x17   : > { %p572_p13 = pneg %p804_p11 }
  0x19   : > { %p573_p0 = pnand %p572_p13, %p571_p12 }
  0x1b   : > { %p574_p3 = pneg %p573_p0 }
  0x1d   : > { %p579_p7 = pnand %p577_p5, %p574_p3 }
  0x1f   : > { %582 = shalt.err (!%p579_p7)
}
  0x20   : > { %s583_s5 = scalar_lea.vmem %s143_s23, 128  ;;  %p591_p4 = scmp.lt.s32.totalorder %s143_s23, %s143_s23 }
  0x21   : > { %p584_p9 = scmp.ne.s32.totalorder %s143_s23, %s583_s5  ;;  %p592_p1 = scmp.lt.s32.totalorder %s583_s5, %s583_s5 }
  0x23   : > { %p586_p10 = pnand %p584_p9, %p572_p13  ;;  %p593_p8 = por %p592_p1, %p591_p4 }
  0x25   : > { %p587_p6 = pneg %p586_p10 }
  0x27   : > { %p594_p2 = pnand %p593_p8, %p587_p6 }
  0x29   : > { %597 = shalt.err (!%p594_p2)
}
  0x2a   : > { %s717_s6 = smov 64   ;;  %s718_s7 = smov 4  }
  0x2b   : > { %488 = dma.hbm_to_vmem [thread:$0]  (!%p804_p11), %s961_s0, 128, %s143_s23, [#allocation3], %s717_s6, %s717_s6, %s718_s7  }
  0x2c   : > { %p40_p1 = scmp.ge.s32.totalorder %s38_s25, 2  ;;  %s73_s16 = sadd.s32 1, %s702_s11 }
  0x2d   : > { %p80_p2 = scmp.ne.s32.totalorder %s702_s11, %s698_s10  ;;  %p81_p4 = scmp.eq.s32.totalorder %s714_s14, 0 }
  0x2e   : > { %s989_s25 = smov (%p40_p1, %s38_s25), 0  ;;  %p975_p8 = scmp.ne.s32.totalorder %s969_s18, 0 }
  0x2f   : > { %p831_p6 = por %p81_p4, %p80_p2  ;;  %s68_s24 = ssub.s32 %s710_s13, %s989_s25 }
  0x30   : > { %p837_p10 = por %p975_p8, %p80_p2  ;;  %p498_p12 = scmp.lt.s32.totalorder %s714_s14, 2 }
  0x31   : > { %p71_p11 = scmp.eq.s32.totalorder %s68_s24, 0  ;;  %s156_s23 = sand.u32 1, %s702_s11  }
  0x32   : > { %s453_s27 = sshll.u32 %s156_s23, 6  ;;  %s475_s29 = sshll.u32 %s710_s13, 10 }
  0x33   : > { %s846_s28 = scalar_select %p71_p11, %s702_s11, %s73_s16  }
  0x34   : > { %s852_s4 = scalar_lea.hbm %s962_s1, %s475_s29  ;;  %s160_s18 = scalar_lea.vmem [#allocation5], %s453_s27 }
  0x35   : > { %s169_s5 = sshll.u32 %s160_s18, 4  ;;  %p858_p13 = pnand %p498_p12, %p831_p6  ;;  %s854_s5 = int_to_ptr.vmem [resolvable:$true] %s169_s5 }
  0x36   : > { %s862_s7 = scalar_lea.sflag [#allocation6], %s156_s23  ;;  %s598_s8 = scalar_lea.hbm %s852_s4, 1024 }
  0x37   : > { %p599_p0 = scmp.ne.s32.totalorder %s852_s4, %s598_s8  ;;  %p600_p3 = pneg %p858_p13 }
  0x38   : > { %s603_s22 = scalar_lea.hbm %s962_s1, 2048  ;;  %p604_p9 = scmp.lt.u32.totalorder %s852_s4, %s962_s1 }
  0x39   : > { %p601_p5 = pnand %p600_p3, %p599_p0  ;;  %p605_p1 = scmp.lt.u32.totalorder %s603_s22, %s598_s8 }
  0x3a   : > { %p607_p4 = scmp.lt.u32.totalorder %s598_s8, %s852_s4 }
  0x3b   : > { %p602_p7 = pneg %p601_p5  ;;  %p606_p2 = por %p605_p1, %p604_p9 }
  0x3d   : > { %p608_p6 = por %p607_p4, %p606_p2 }
  0x3f   : > { %p609_p8 = pnand %p608_p6, %p602_p7 }
  0x41   : > { %612 = shalt.err (!%p609_p8)
}
  0x42   : > { %s613_s23 = scalar_lea.vmem %s854_s5, 1024  ;;  %s719_s29 = smov [#allocation5]  }
  0x43   : > { %p614_p12 = scmp.ne.s32.totalorder %s854_s5, %s613_s23  ;;  %s618_s30 = sshll.u32 %s719_s29, 4  ;;  %s619_s30 = int_to_ptr.vmem [resolvable:$false] %s618_s30 }
  0x44   : > { %s620_s3 = scalar_lea.vmem %s619_s30, 2048  ;;  %p621_p5 = scmp.lt.s32.totalorder %s854_s5, %s619_s30 }
  0x45   : > { %p616_p11 = pnand %p614_p12, %p600_p3  ;;  %p622_p9 = scmp.lt.s32.totalorder %s620_s3, %s613_s23 }
  0x47   : > { %p617_p0 = pneg %p616_p11  ;;  %p623_p1 = por %p622_p9, %p621_p5 }
  0x49   : > { %p624_p2 = pnand %p623_p1, %p617_p0 }
  0x4b   : > { %627 = shalt.err (!%p624_p2)
}
  0x4c   : > { %s720_s18 = smov 128   ;;  %s721_s8 = smov 8  }
  0x4d   : > { %492 = dma.hbm_to_vmem [thread:$0]  (!%p858_p13), %s852_s4, 1024, %s854_s5, %s862_s7, %s720_s18, %s720_s18, %s721_s8  }
  0x4e   : > { %p978_p3 = scmp.ne.s32.totalorder %s972_s21, 0 }
  0x4f   : > { %p979_p7 = scmp.ne.s32.totalorder (!%p978_p3), %s968_s17, 0 }
  0x50   : > { %181 = sbr.rel (%p978_p3) target bundleno = 339 (0x153), region = 28 }
  0x57   : > { %681 = dma.done.wait (%p979_p7), [#allocation3], 128  }
  0x58   : > { %683 = vsyncadd (%p979_p7), [#allocation3], 4294967168  ;;  %s897_s15 = sand.u32 1, %s698_s10   ;;  %p980_p4 = scmp.ne.s32.totalorder %s970_s19, 0 }
  0x59   : > { %s458_s16 = sshll.u32 %s897_s15, 6  ;;  %s188_s22 = scalar_lea.sflag [#allocation6], %s897_s15 }
  0x5a   : > { %s191_s24 = scalar_lea.vmem [#allocation5], %s458_s16 }
  0x5b   : > { %685 = dma.done.wait (%p980_p4), %s188_s22, 1024  }
  0x5c   : > { %687 = vsyncadd (%p980_p4), %s188_s22, 4294966272  ;;  %v722_v0 = vmov 0   ;;  %v557_v1 = vld [vmem:[%s191_s24 + $0x4] ss:$8 sps:$4 sm:$0xff]   ;;  %v559_v2 = vld [vmem:[%s191_s24] ss:$8 sps:$4 sm:$0xff]  }
  0x5d   : > { %308 = vmatprep.mubr.bf16.mxu0 %v722_v0  ;;  %276 = vmatprep.subr.bf16.mxu0 %v557_v1  ;;  %v560_v3 = vld [vmem:[%s191_s24 + $0x14] ss:$8 sps:$4 sm:$0xff]   ;;  %v562_v4 = vld [vmem:[%s191_s24 + $0x10] ss:$8 sps:$4 sm:$0xff]   ;;  %v563_v5 = vld [vmem:[%s191_s24 + $0x24] ss:$8 sps:$4 sm:$0xff]  }
  0x5e   : > { %277 = vmatpush1.bf16.msra.mxu0 %v559_v2  ;;  %v565_v6 = vld [vmem:[%s191_s24 + $0x20] ss:$8 sps:$4 sm:$0xff]   ;;  %v566_v7 = vld [vmem:[%s191_s24 + $0x34] ss:$8 sps:$4 sm:$0xff]   ;;  %v568_v8 = vld [vmem:[%s191_s24 + $0x30] ss:$8 sps:$4 sm:$0xff]  }
  0x5f   : > { %278 = vmatprep.subr.bf16.mxu0 %v560_v3  ;;  %v569_v9 = vld [vmem:[#allocation2] sm:$0xff]   ;;  %vm272_vm0 = vcmask 523264   ;;  %s459_s17 = sshll.u32 %s897_s15, 5  ;;  %s476_s4 = sshll.u32 %s706_s12, 9 }
  0x60   : > { %s211_s19 = scalar_lea.vmem [#allocation7], %s459_s17  ;;  %s912_s7 = scalar_lea.hbm %s963_s2, %s476_s4 }
  0x61   : > { %s342_s21 = sshll.u32 %s211_s19, 4  ;;  %s324_s27 = scalar_lea.sflag [#allocation4], %s897_s15  ;;  %s907_s21 = int_to_ptr.vmem [resolvable:$true] %s342_s21 }
  0x62   : > { %279 = vmatpush1.bf16.msra.mxu0 %v562_v4  ;;  %s628_s12 = scalar_lea.vmem %s907_s21, 512  ;;  %s723_s23 = smov [#allocation7]  }
  0x63   : > { %280 = vmatprep.subr.bf16.mxu0 %v563_v5  ;;  %p629_p13 = scmp.ne.s32.totalorder %s907_s21, %s628_s12  ;;  %s632_s29 = sshll.u32 %s723_s23, 4  ;;  %s633_s29 = int_to_ptr.vmem [resolvable:$false] %s632_s29 }
  0x64   : > { %s634_s30 = scalar_lea.vmem %s633_s29, 1024  ;;  %p635_p12 = scmp.lt.s32.totalorder %s907_s21, %s633_s29 }
  0x65   : > { %p630_p6 = pnand %p629_p13, %p837_p10  ;;  %p636_p11 = scmp.lt.s32.totalorder %s634_s30, %s628_s12 }
  0x66   : > { %281 = vmatpush1.bf16.msra.mxu0 %v565_v6 }
  0x67   : > { %282 = vmatprep.subr.bf16.mxu0 %v566_v7  ;;  %p631_p8 = pneg %p630_p6  ;;  %p637_p0 = por %p636_p11, %p635_p12 }
  0x69   : > { %p638_p5 = pnand %p637_p0, %p631_p8 }
  0x6a   : > { %283 = vmatpush1.bf16.msra.mxu0 %v568_v8 }
  0x6d   : > { %469 = vmatmul.mubr.msk.bf16.vlgmr.msra.gmra.mrb[0].mxu0 %vm272_vm0, %v569_v9 }
 0x140   : > { %v310_v10 = vpop.f32.mrb[0].mxu0 }
 0x141   : > { %319 = vst [vmem:[%s211_s19] sm:$0xff] %v310_v10  ;;  %v312_v11 = vpop.f32.mrb[1].mxu0 }
 0x142   : > { %320 = vst [vmem:[%s211_s19 + $0x8] sm:$0xff] %v312_v11  ;;  %v314_v12 = vpop.f32.mrb[2].mxu0 }
 0x143   : > { %321 = vst [vmem:[%s211_s19 + $0x10] sm:$0xff] %v314_v12  ;;  %v316_v13 = vpop.f32.mrb[3].mxu0 }
 0x144   : > { %322 = vst [vmem:[%s211_s19 + $0x18] sm:$0xff] %v316_v13 }
 0x145   : > { %641 = shalt.err (!%p638_p5)
}
 0x146   : > { %s642_s3 = scalar_lea.hbm %s912_s7, 512  ;;  %s646_s16 = scalar_lea.hbm %s963_s2, 1024 }
 0x147   : > { %p643_p9 = scmp.ne.s32.totalorder %s912_s7, %s642_s3  ;;  %p647_p3 = scmp.lt.u32.totalorder %s912_s7, %s963_s2 }
 0x148   : > { %p648_p7 = scmp.lt.u32.totalorder %s646_s16, %s642_s3  ;;  %p650_p13 = scmp.lt.u32.totalorder %s642_s3, %s912_s7 }
 0x149   : > { %p644_p1 = pnand %p643_p9, %p837_p10 }
 0x14a   : > { %p649_p4 = por %p648_p7, %p647_p3 }
 0x14b   : > { %p645_p2 = pneg %p644_p1 }
 0x14c   : > { %p651_p6 = por %p650_p13, %p649_p4 }
 0x14e   : > { %p652_p8 = pnand %p651_p6, %p645_p2 }
 0x150   : > { %655 = shalt.err (!%p652_p8)
}
 0x151   : > { %s724_s17 = smov 256   ;;  %s725_s19 = smov 16  }
 0x152   : > { %483 = dma.vmem_to_hbm [thread:$0]  (%p837_p10), %s907_s21, 512, %s912_s7, %s324_s27, %s724_s17, %s724_s17, %s725_s19  }
 0x153 PF: > { %s357_s4 = sand.u32 1, %s694_s9   ;;  %p981_p12 = scmp.ne.s32.totalorder %s971_s20, 0 }
 0x154   : > { %p982_p11 = scmp.ge.s32.totalorder %s714_s14, 2  ;;  %s358_s5 = scalar_lea.sflag [#allocation4], %s357_s4 }
 0x156   : > { %p494_p0 = pnand %p982_p11, %p981_p12 }
 0x158   : > { %689 = dma.done.wait (!%p494_p0), %s358_s5, 512  }
 0x159   : > { %691 = vsyncadd (!%p494_p0), %s358_s5, 4294966784  ;;  %s19_s14 = sadd.s32 1, %s714_s14   ;;  %s983_s9 = smov %s698_s10 }
 0x15a   : > { %p16_p5 = scmp.ge.s32.totalorder %s19_s14, 4   ;;  %s984_s10 = smov %s702_s11 }
 0x15b   : > { %s985_s11 = smov %s846_s28  ;;  %s986_s12 = smov %s710_s13 }
 0x15c   : > { %s987_s13 = smov %s989_s25  ;;  %18 = sbr.rel (!%p16_p5) target bundleno = 7 (0x7), region = 79 }
 0x163   :  { %363 = vsyncpa [#allocation3], 1 }
 0x164   :  { %365 = vsyncpa [#allocation3 + $0x1], 1 }
 0x165   :  { %366 = vsyncpa [#allocation6], 1 }
 0x166   :  { %368 = vsyncpa [#allocation6 + $0x1], 1 }
 0x167   :  { %369 = vsyncpa [#allocation4], 1 }
 0x168   :  { %371 = vsyncpa [#allocation4 + $0x1], 1 }

</bundles_post_ra>
